<compile_context>
chip_gen: v6e
topology: v6e:2x2x1
jax: 0.10.0
libtpu: 0.0.40
codegen_flags: <defaults>
</compile_context>

<pallas_src>
import math

import jax
import jax.numpy as jnp
from jax.experimental import pallas as pl
from jax.experimental.pallas import tpu as pltpu

_SQRT_HALF = 0.7071067811865476


def _gelu_exact(x):
    # PyTorch nn.GELU() default: exact erf formulation, evaluated in f32.
    return 0.5 * x * (1.0 + jax.lax.erf(x * jnp.float32(_SQRT_HALF)))


def mlp_kernel(x_ref, w1_ref, b1_ref, w2_ref, b2_ref, o_ref, acc_ref):
    # Grid: (row tiles i, hidden tiles k). k is the reduction axis of the
    # second matmul; accumulate partial products in f32 scratch.
    k = pl.program_id(1)

    @pl.when(k == 0)
    def _():
        acc_ref[...] = jnp.zeros_like(acc_ref)

    # Linear 1 over this hidden slice: bf16 MXU inputs, f32 accumulate.
    h = jnp.dot(x_ref[...].astype(jnp.bfloat16), w1_ref[...],
                preferred_element_type=jnp.float32)
    # Bias + exact GELU in f32 (strict nn.GELU() parity).
    h = _gelu_exact(h + b1_ref[...])

    # Linear 2 partial product for this hidden slice; f32 accumulation.
    acc_ref[...] += jnp.dot(h.astype(jnp.bfloat16), w2_ref[...],
                            preferred_element_type=jnp.float32)

    @pl.when(k == pl.num_programs(1) - 1)
    def _():
        o_ref[...] = (acc_ref[...] + b2_ref[...]).astype(o_ref.dtype)


def _pick_hidden_tile(H):
    # Prefer 256-multiples (v6e/v7x MXU is 2x256^2; 128 suffices on v5e).
    if H <= 512:
        return H
    for t in (512, 256, 128):
        if H % t == 0:
            return t
    return H  # odd H: fall back to a single hidden step


def _vmem_need_bytes(bm, D, tH, x_bytes, out_bytes):
    dbuf = 2 * (bm * D * x_bytes        # x tile
                + D * tH * 2            # w1 tile (bf16)
                + tH * D * 2            # w2 tile (bf16)
                + 8 * tH * 4            # b1 (sublane-padded)
                + 8 * D * 4             # b2 (sublane-padded)
                + bm * D * out_bytes)   # out tile
    return dbuf + bm * D * 4            # f32 accumulator scratch


def mlp_pallas(x, w1, b1, w2, b2, *, block_rows=512):
    """y = GELU(x @ w1 + b1) @ w2 + b2   (dropout = identity, eval mode).

    x:  (..., D)   w1: (D, H)   b1: (1, H) or (H,)   w2: (H, D)   b2: (1, D) or (D,)
    Weights use (in, out) layout (transpose of PyTorch's (out, in)). Pass bf16
    weights (cast once at parameter-creation time) to avoid a per-call f32->bf16
    HBM round trip; f32 weights are accepted and cast here.
    """
    orig_shape = x.shape
    D = orig_shape[-1]
    H = w1.shape[1]
    M = math.prod(orig_shape[:-1])
    x2 = x.reshape(M, D)

    # Row tile: single block when small, otherwise block_rows (ragged last
    # block handled by Pallas, no wrapper pad/slice round trips).
    bm = M if M <= block_rows else block_rows
    tH = _pick_hidden_tile(H)

    x_bytes = x2.dtype.itemsize
    out_bytes = x.dtype.itemsize
    # Keep the VMEM footprint comfortably under v7x's 64 MiB per TensorCore.
    budget = 48 * 2**20
    while bm > 256 and _vmem_need_bytes(bm, D, tH, x_bytes, out_bytes) > budget:
        bm //= 2
    need = _vmem_need_bytes(bm, D, tH, x_bytes, out_bytes)
    vmem_limit = int(min(max(1.25 * need + (1 << 20), 32 * 2**20), 64 * 2**20))

    grid = (pl.cdiv(M, bm), pl.cdiv(H, tH))

    # bf16 weights for the MXU (no-op if already bf16), f32 biases for the VPU.
    w1b = w1.astype(jnp.bfloat16)
    w2b = w2.astype(jnp.bfloat16)
    b1f = b1.reshape(1, H).astype(jnp.float32)
    b2f = b2.reshape(1, D).astype(jnp.float32)

    cost = pl.CostEstimate(
        flops=4 * M * D * H,
        transcendentals=M * H,
        bytes_accessed=int(M * D * (x_bytes + out_bytes)
                           + grid[0] * 2 * D * H * 2
                           + 4 * (H + D)),
    )

    out = pl.pallas_call(
        mlp_kernel,
        out_shape=jax.ShapeDtypeStruct((M, D), x.dtype),
        grid=grid,
        in_specs=[
            pl.BlockSpec((bm, D), lambda i, k: (i, 0)),   # x: resident across k
            pl.BlockSpec((D, tH), lambda i, k: (0, k)),   # w1 hidden slice
            pl.BlockSpec((1, tH), lambda i, k: (0, k)),   # b1 hidden slice
            pl.BlockSpec((tH, D), lambda i, k: (k, 0)),   # w2 hidden slice
            pl.BlockSpec((1, D), lambda i, k: (0, 0)),    # b2: resident
        ],
        out_specs=pl.BlockSpec((bm, D), lambda i, k: (i, 0)),
        scratch_shapes=[pltpu.VMEM((bm, D), jnp.float32)],
        compiler_params=pltpu.CompilerParams(
            dimension_semantics=("parallel", "arbitrary"),
            vmem_limit_bytes=vmem_limit),
        cost_estimate=cost,
    )(x2, w1b, b1f, w2b, b2f)

    return out.reshape(orig_shape)


def mlp_ref(x, w1, b1, w2, b2):
    """Pure-JAX f32 reference mirroring the PyTorch forward (eval mode)."""
    h = jax.nn.gelu(x @ w1 + b1, approximate=False)
    return h @ w2 + b2


def make_params(key, dim, hidden_dim):
    ks = jax.random.split(key, 4)
    s = 0.05
    return {
        'w1': s * jax.random.normal(ks[0], (dim, hidden_dim), jnp.float32),
        'b1': s * jax.random.normal(ks[1], (1, hidden_dim), jnp.float32),
        'w2': s * jax.random.normal(ks[2], (hidden_dim, dim), jnp.float32),
        'b2': s * jax.random.normal(ks[3], (1, dim), jnp.float32),
    }


if __name__ == "__main__":
    # Small but representative: lane-dense D, multiple hidden (reduction) tiles.
    B, N, DIM, HIDDEN = 2, 8, 128, 1024

    key = jax.random.PRNGKey(0)
    kx, kp = jax.random.split(key)
    x = jax.random.normal(kx, (B, N, DIM), jnp.float32)
    p = make_params(kp, DIM, HIDDEN)

    # Pre-cast weights once (parameter-creation time), not per forward call.
    w1b = p['w1'].astype(jnp.bfloat16)
    w2b = p['w2'].astype(jnp.bfloat16)

    out = mlp_pallas(x, w1b, p['b1'], w2b, p['b2'])
    out = jax.block_until_ready(out)

    ref = mlp_ref(x, p['w1'], p['b1'], p['w2'], p['b2'])
    assert out.shape == (B, N, DIM)
    assert jnp.allclose(out, ref, rtol=2e-2, atol=2e-2), "mismatch vs JAX reference"

    print("KERNEL_OK")
</pallas_src>

<mosaic_0001>
module attributes {stable_mosaic.version = 11 : i64} {
  func.func @mlp_kernel(%arg0: i32, %arg1: i32, %arg2: memref<16x128xf32, #tpu.memory_space<vmem>>, %arg3: memref<128x512xbf16, #tpu.memory_space<vmem>>, %arg4: memref<1x512xf32, #tpu.memory_space<vmem>>, %arg5: memref<512x128xbf16, #tpu.memory_space<vmem>>, %arg6: memref<1x128xf32, #tpu.memory_space<vmem>>, %arg7: memref<16x128xf32, #tpu.memory_space<vmem>>, %arg8: memref<16x128xf32, #tpu.memory_space<vmem>>) attributes {dimension_semantics = [#tpu.dimension_semantics<parallel>, #tpu.dimension_semantics<arbitrary>], iteration_bounds = array<i64: 1, 2>, scalar_prefetch = 0 : i64, scratch_operands = 1 : i64, tpu.core_type = #tpu.core_type<tc>, window_params = [{transform_indices = @transform_0, window_bounds = array<i64: 16, 128>}, {transform_indices = @transform_1, window_bounds = array<i64: 128, 512>}, {transform_indices = @transform_2, window_bounds = array<i64: 1, 512>}, {transform_indices = @transform_3, window_bounds = array<i64: 512, 128>}, {pipeline_mode = #tpu.pipeline_mode<synchronous>, transform_indices = @transform_4, window_bounds = array<i64: 1, 128>}, {transform_indices = @transform_5, window_bounds = array<i64: 16, 128>}]} {
    %c0_i32 = arith.constant 0 : i32
    %0 = arith.cmpi eq, %arg1, %c0_i32 : i32
    %1 = arith.extui %0 : i1 to i32
    %c0_i32_0 = arith.constant 0 : i32
    %2 = arith.cmpi ne, %1, %c0_i32_0 : i32
    scf.if %2 {
      %cst_17 = arith.constant 0.000000e+00 : f32
      %27 = vector.broadcast %cst_17 : f32 to vector<16x128xf32>
      %c0_18 = arith.constant 0 : index
      %c0_19 = arith.constant 0 : index
      %28 = vector.load %arg8[%c0_18, %c0_19] : memref<16x128xf32, #tpu.memory_space<vmem>>, vector<16x128xf32>
      tpu.vector_store %arg8[%c0_18, %c0_19], %27 {strides = array<i32>} : memref<16x128xf32, #tpu.memory_space<vmem>>, vector<16x128xf32>,
    } else {
    }
    %c0 = arith.constant 0 : index
    %c0_1 = arith.constant 0 : index
    %3 = vector.load %arg2[%c0, %c0_1] : memref<16x128xf32, #tpu.memory_space<vmem>>, vector<16x128xf32>
    %4 = arith.truncf %3 : vector<16x128xf32> to vector<16x128xbf16>
    %c0_2 = arith.constant 0 : index
    %c0_3 = arith.constant 0 : index
    %5 = vector.load %arg3[%c0_2, %c0_3] : memref<128x512xbf16, #tpu.memory_space<vmem>>, vector<128x512xbf16>
    %cst = arith.constant dense<0.000000e+00> : vector<16x512xf32>
    %6 = tpu.matmul %4, %5, %cst {dimension_numbers = #tpu.dot_dimension_numbers<[1], [0], [0], [1], [0, 0, 1, 1], [], []>} : vector<16x128xbf16>, vector<128x512xbf16>, vector<16x512xf32> -> vector<16x512xf32>
    %c0_4 = arith.constant 0 : index
    %c0_5 = arith.constant 0 : index
    %7 = vector.load %arg4[%c0_4, %c0_5] : memref<1x512xf32, #tpu.memory_space<vmem>>, vector<1x512xf32>
    %8 = vector.broadcast %7 : vector<1x512xf32> to vector<16x512xf32>
    %9 = arith.addf %6, %8 : vector<16x512xf32>
    %cst_6 = arith.constant 5.000000e-01 : f32
    %10 = vector.broadcast %cst_6 : f32 to vector<16x512xf32>
    %11 = arith.mulf %10, %9 : vector<16x512xf32>
    %cst_7 = arith.constant 0.707106769 : f32
    %12 = vector.broadcast %cst_7 : f32 to vector<16x512xf32>
    %13 = arith.mulf %9, %12 : vector<16x512xf32>
    %14 = math.erf %13 : vector<16x512xf32>
    %cst_8 = arith.constant 1.000000e+00 : f32
    %15 = vector.broadcast %cst_8 : f32 to vector<16x512xf32>
    %16 = arith.addf %15, %14 : vector<16x512xf32>
    %17 = arith.mulf %11, %16 : vector<16x512xf32>
    %c0_9 = arith.constant 0 : index
    %c0_10 = arith.constant 0 : index
    %18 = vector.load %arg8[%c0_9, %c0_10] : memref<16x128xf32, #tpu.memory_space<vmem>>, vector<16x128xf32>
    %19 = arith.truncf %17 : vector<16x512xf32> to vector<16x512xbf16>
    %c0_11 = arith.constant 0 : index
    %c0_12 = arith.constant 0 : index
    %20 = vector.load %arg5[%c0_11, %c0_12] : memref<512x128xbf16, #tpu.memory_space<vmem>>, vector<512x128xbf16>
    %cst_13 = arith.constant dense<0.000000e+00> : vector<16x128xf32>
    %21 = tpu.matmul %19, %20, %cst_13 {dimension_numbers = #tpu.dot_dimension_numbers<[1], [0], [0], [1], [0, 0, 1, 1], [], []>} : vector<16x512xbf16>, vector<512x128xbf16>, vector<16x128xf32> -> vector<16x128xf32>
    %22 = arith.addf %18, %21 : vector<16x128xf32>
    %c0_14 = arith.constant 0 : index
    %c0_15 = arith.constant 0 : index
    %23 = vector.load %arg8[%c0_14, %c0_15] : memref<16x128xf32, #tpu.memory_space<vmem>>, vector<16x128xf32>
    tpu.vector_store %arg8[%c0_14, %c0_15], %22 {strides = array<i32>} : memref<16x128xf32, #tpu.memory_space<vmem>>, vector<16x128xf32>,
    %c1_i32 = arith.constant 1 : i32
    %24 = arith.cmpi eq, %arg1, %c1_i32 : i32
    %25 = arith.extui %24 : i1 to i32
    %c0_i32_16 = arith.constant 0 : i32
    %26 = arith.cmpi ne, %25, %c0_i32_16 : i32
    scf.if %26 {
      %c0_17 = arith.constant 0 : index
      %c0_18 = arith.constant 0 : index
      %27 = vector.load %arg8[%c0_17, %c0_18] : memref<16x128xf32, #tpu.memory_space<vmem>>, vector<16x128xf32>
      %c0_19 = arith.constant 0 : index
      %c0_20 = arith.constant 0 : index
      %28 = vector.load %arg6[%c0_19, %c0_20] : memref<1x128xf32, #tpu.memory_space<vmem>>, vector<1x128xf32>
      %29 = vector.broadcast %28 : vector<1x128xf32> to vector<16x128xf32>
      %30 = arith.addf %27, %29 : vector<16x128xf32>
      %c0_21 = arith.constant 0 : index
      %c0_22 = arith.constant 0 : index
      %31 = vector.load %arg7[%c0_21, %c0_22] : memref<16x128xf32, #tpu.memory_space<vmem>>, vector<16x128xf32>
      tpu.vector_store %arg7[%c0_21, %c0_22], %30 {strides = array<i32>} : memref<16x128xf32, #tpu.memory_space<vmem>>, vector<16x128xf32>,
    } else {
    }
    return
  }
  func.func @transform_0(%arg0: i32, %arg1: i32) -> (i32, i32) {
    %c0_i32 = arith.constant 0 : i32
    %c0_i32_0 = arith.constant 0 : i32
    return %arg0, %c0_i32 : i32, i32
  }
  func.func @transform_1(%arg0: i32, %arg1: i32) -> (i32, i32) {
    %c0_i32 = arith.constant 0 : i32
    %c0_i32_0 = arith.constant 0 : i32
    return %c0_i32, %arg1 : i32, i32
  }
  func.func @transform_2(%arg0: i32, %arg1: i32) -> (i32, i32) {
    %c0_i32 = arith.constant 0 : i32
    %c0_i32_0 = arith.constant 0 : i32
    return %c0_i32, %arg1 : i32, i32
  }
  func.func @transform_3(%arg0: i32, %arg1: i32) -> (i32, i32) {
    %c0_i32 = arith.constant 0 : i32
    %c0_i32_0 = arith.constant 0 : i32
    return %arg1, %c0_i32 : i32, i32
  }
  func.func @transform_4(%arg0: i32, %arg1: i32) -> (i32, i32) {
    %c0_i32 = arith.constant 0 : i32
    %c0_i32_0 = arith.constant 0 : i32
    %c0_i32_1 = arith.constant 0 : i32
    return %c0_i32, %c0_i32_0 : i32, i32
  }
  func.func @transform_5(%arg0: i32, %arg1: i32) -> (i32, i32) {
    %c0_i32 = arith.constant 0 : i32
    %c0_i32_0 = arith.constant 0 : i32
    return %arg0, %c0_i32 : i32, i32
  }
}

</mosaic_0001>

<bundles_post_ra>
// kernel: tpu_custom_call.1
= control target key start
LH: loop header
LB: loop body
LE: loop exit
PB: predicated region body
PF: predicated region fallthrough
CT: control target
= control target key end

     0   :  { %s2015_s0 = inlined_call_operand.hbm [shape: f32[16,128], index: 0, kind: input, shape index: {}]   ;;  %s2016_s1 = inlined_call_operand.hbm [shape: bf16[128,1024], index: 1, kind: input, shape index: {}]   ;;  %s2017_s2 = inlined_call_operand.hbm [shape: f32[1,1024], index: 2, kind: input, shape index: {}]   ;;  %s2018_s3 = inlined_call_operand.hbm [shape: bf16[1024,128], index: 3, kind: input, shape index: {}]   ;;  %s2019_s4 = inlined_call_operand.vmem [shape: f32[1,128], index: 4, kind: input, shape index: {}]   ;;  %s2020_s5 = inlined_call_operand.hbm [shape: f32[16,128], index: 5, kind: output, shape index: {}]  }
   0x1   :  { %2023 = sst [smem:[#allocation16_spill]] %s2015_s0 }
   0x2   :  { %10 = vsyncpa [#allocation4], 0 }
   0x3   :  { %11 = vsyncpa [#allocation7], 0 }
   0x4   :  { %13 = vsyncpa [#allocation7 + $0x1], 0 }
   0x5   :  { %14 = vsyncpa [#allocation10], 0 }
   0x6   :  { %16 = vsyncpa [#allocation10 + $0x1], 0 }
   0x7   :  { %17 = vsyncpa [#allocation5], 0  ;;  %s1766_s18 = smov 0   ;;  %s1768_s19 = smov 0  }
   0x8   :  { %s1770_s20 = smov 0   ;;  %s1772_s21 = smov 0  }
   0x9   :  { %s1774_s22 = smov 0   ;;  %s1776_s23 = smov 0  }
   0xa LB: > { %s32_s24 = sadd.s32 1, %s1714_s22  ;;  %s68_s25 = sadd.s32 1, %s1706_s20  ;;  %s1718_s23 = sphi %s1776_s23, %s23_s23   ;;  %s1714_s22 = sphi %s1774_s22, %s2036_s22   ;;  %s1710_s21 = sphi %s1772_s21, %s2035_s21   ;;  %s1706_s20 = sphi %s1770_s20, %s2034_s20   ;;  %s1702_s19 = sphi %s1768_s19, %s2033_s19   ;;  %s1698_s18 = sphi %s1766_s18, %s2032_s18  }
   0xb   : > { %p33_p0 = scmp.ge.s32.totalorder %s32_s24, 2  ;;  %p75_p1 = scmp.ne.s32.totalorder %s1706_s20, %s1702_s19 }
   0xc   : > { %p76_p2 = scmp.eq.s32.totalorder %s1718_s23, 0  ;;  %p1361_p4 = scmp.lt.s32.totalorder %s1718_s23, 2 }
   0xd   : > { %s2038_s24 = smov (%p33_p0, %s32_s24), 0  ;;  %s223_s27 = sand.u32 1, %s1718_s23  }
   0xe   : > { %p77_p3 = por %p76_p2, %p75_p1  ;;  %s65_s26 = ssub.s32 %s1714_s22, %s2038_s24 }
   0xf   : > { %p66_p5 = scmp.eq.s32.totalorder %s65_s26, 0  ;;  %s1808_s28 = sand.u32 1, %s1706_s20  }
  0x10   : > { %s1285_s29 = sshll.u32 %s1714_s22, 8  ;;  %s2022_s6 = sshll.u32 %s1808_s28, 8 }
  0x11   : > { %s1812_s30 = scalar_select %p66_p5, %s1706_s20, %s68_s25  }
  0x12   : > { %s233_s9 = scalar_lea.hbm %s2016_s1, %s1285_s29  ;;  %p1818_p6 = pnand %p1361_p4, %p77_p3 }
  0x13   : > { %s227_s11 = scalar_lea.vmem [#allocation6], %s2022_s6  ;;  %s1824_s13 = scalar_lea.sflag [#allocation7], %s223_s27 }
  0x14   : > { %s234_s12 = sshll.u32 %s227_s11, 4  ;;  %p1524_p7 = pneg %p1818_p6  ;;  %s235_s12 = int_to_ptr.vmem [resolvable:$true] %s234_s12 }
  0x15   : > { %s1535_s14 = scalar_lea.vmem %s235_s12, 4096  ;;  %s1720_s15 = smov [#allocation6]  }
  0x16   : > { %p1536_p8 = scmp.ne.s32.totalorder %s235_s12, %s1535_s14  ;;  %s1540_s16 = sshll.u32 %s1720_s15, 4  ;;  %s1541_s16 = int_to_ptr.vmem [resolvable:$false] %s1540_s16 }
  0x17   : > { %s1542_s17 = scalar_lea.vmem %s1541_s16, 8192  ;;  %p1543_p11 = scmp.lt.s32.totalorder %s235_s12, %s1541_s16 }
  0x18   : > { %p1538_p9 = pnand %p1536_p8, %p1524_p7  ;;  %p1544_p12 = scmp.lt.s32.totalorder %s1542_s17, %s1535_s14 }
  0x1a   : > { %p1539_p10 = pneg %p1538_p9  ;;  %p1545_p13 = por %p1544_p12, %p1543_p11 }
  0x1c   : > { %p1546_p0 = pnand %p1545_p13, %p1539_p10 }
  0x1e   : > { %1549 = shalt.err (!%p1546_p0)
}
  0x1f   : > { %s1721_s25 = smov 512   ;;  %s1722_s26 = smov 256  }
  0x20   : > { %s1723_s27 = smov 16   ;;  %s1835_s29 = sadd.s32 4294967295, %s1718_s23  }
  0x21   : > { %1353 = dma.hbm_to_vmem [thread:$0]  (!%p1818_p6), %s233_s9, 4096, %s235_s12, %s1824_s13, %s1721_s25, %s1722_s26, %s1723_s27  }
  0x22   : > { %p81_p1 = scmp.ne.s32.totalorder %s1702_s19, %s1698_s18  ;;  %p2021_p2 = scmp.eq.s32.totalorder %s1835_s29, 0 }
  0x23   : > { %p1197_p3 = scmp.ge.s32.totalorder %s1718_s23, 1  ;;  %p191_p4 = scmp.lt.s32.totalorder %s1718_s23, 3 }
  0x24   : > { %p1844_p5 = por %p2021_p2, %p81_p1  ;;  %s1724_s9 = smov [#allocation3]  }
  0x25   : > { %p1848_p8 = pnand %p1197_p3, %p191_p4  ;;  %s206_s11 = sshll.u32 %s1724_s9, 4  ;;  %s207_s11 = int_to_ptr.vmem [resolvable:$true] %s206_s11 }
  0x26   : > { %s1203_s12 = sshll.u32 %s1808_s28, 2  ;;  %s1286_s18 = sshll.u32 %s1714_s22, 6 }
  0x27   : > { %p1346_p9 = pneg %p1848_p8  ;;  %s1865_s17 = scalar_lea.hbm %s2017_s2, %s1286_s18 }
  0x28   : > { %s248_s25 = scalar_lea.vmem [#allocation8], %s1203_s12  ;;  %s1561_s27 = scalar_lea.vmem %s207_s11, 256 }
  0x29   : > { %p1858_p10 = pnand %p1346_p9, %p2021_p2  ;;  %s256_s26 = sshll.u32 %s248_s25, 4  ;;  %s257_s26 = int_to_ptr.vmem [resolvable:$true] %s256_s26 }
  0x2a   : > { %p1562_p12 = scmp.ne.s32.totalorder %s207_s11, %s1561_s27  ;;  %p1569_p1 = scmp.lt.s32.totalorder %s207_s11, %s207_s11 }
  0x2b   : > { %p1552_p11 = pneg %p1858_p10  ;;  %p1570_p3 = scmp.lt.s32.totalorder %s1561_s27, %s1561_s27 }
  0x2d   : > { %p1564_p13 = pnand %p1562_p12, %p1552_p11  ;;  %p1571_p4 = por %p1570_p3, %p1569_p1 }
  0x2f   : > { %p1565_p0 = pneg %p1564_p13 }
  0x31   : > { %p1572_p9 = pnand %p1571_p4, %p1565_p0 }
  0x33   : > { %1575 = shalt.err (!%p1572_p9)
}
  0x34   : > { %s1725_s9 = smov 128   ;;  %s1726_s15 = smov 8  }
  0x35   : > { %s2028_s0 = sld [smem:[#allocation16_spill]]  ;;  %s1589_s16 = scalar_lea.vmem %s257_s26, 64 }
  0x36   : > { %p1590_p2 = scmp.ne.s32.totalorder %s257_s26, %s1589_s16  ;;  %s1727_s25 = smov [#allocation8]  }
  0x37   : > { %s1594_s27 = sshll.u32 %s1727_s25, 4  ;;  %s1595_s27 = int_to_ptr.vmem [resolvable:$false] %s1594_s27 }
  0x38   : > { %p1592_p11 = pnand %p1590_p2, %p1524_p7  ;;  %s1596_s6 = scalar_lea.vmem %s1595_s27, 128 }
  0x39   : > { %p1597_p13 = scmp.lt.s32.totalorder %s257_s26, %s1595_s27  ;;  %p1598_p0 = scmp.lt.s32.totalorder %s1596_s6, %s1589_s16 }
  0x3a   : > { %p1593_p12 = pneg %p1592_p11 }
  0x3b   : > { %1349 = dma.hbm_to_vmem [thread:$0]  (!%p1858_p10), %s2028_s0, 256, %s207_s11, [#allocation4], %s1725_s9, %s1725_s9, %s1726_s15  }
  0x3c   : > { %p1599_p1 = por %p1598_p0, %p1597_p13 }
  0x3e   : > { %p1600_p3 = pnand %p1599_p1, %p1593_p12 }
  0x40   : > { %1603 = shalt.err (!%p1600_p3)
}
  0x41   : > { %1356 = dma.hbm_to_vmem [thread:$0]  (!%p1818_p6), %s1865_s17, 64, %s257_s26, %s1824_s13  }
  0x42   : > { %s1287_s11 = sshll.u32 %s1714_s22, 12  ;;  %s2029_s14 = sshll.u32 %s1808_s28, 8 }
  0x43   : > { %s267_s9 = scalar_lea.vmem [#allocation9], %s2029_s14  ;;  %s273_s6 = scalar_lea.hbm %s2018_s3, %s1287_s11 }
  0x44   : > { %s274_s15 = sshll.u32 %s267_s9, 4  ;;  %s264_s16 = scalar_lea.sflag [#allocation10], %s1808_s28  ;;  %s275_s15 = int_to_ptr.vmem [resolvable:$true] %s274_s15 }
  0x45   : > { %s1617_s25 = scalar_lea.vmem %s275_s15, 4096  ;;  %s1728_s27 = smov [#allocation9]  }
  0x46   : > { %p1618_p2 = scmp.ne.s32.totalorder %s275_s15, %s1617_s25  ;;  %s1622_s0 = sshll.u32 %s1728_s27, 4  ;;  %s1623_s0 = int_to_ptr.vmem [resolvable:$false] %s1622_s0 }
  0x47   : > { %s1624_s13 = scalar_lea.vmem %s1623_s0, 8192  ;;  %p1625_p9 = scmp.lt.s32.totalorder %s275_s15, %s1623_s0 }
  0x48   : > { %p1620_p10 = pnand %p1618_p2, %p1524_p7  ;;  %p1626_p11 = scmp.lt.s32.totalorder %s1624_s13, %s1617_s25 }
  0x4a   : > { %p1621_p4 = pneg %p1620_p10  ;;  %p1627_p12 = por %p1626_p11, %p1625_p9 }
  0x4c   : > { %p1628_p13 = pnand %p1627_p12, %p1621_p4 }
  0x4e   : > { %1631 = shalt.err (!%p1628_p13)
}
  0x4f   : > { %s1729_s17 = smov 64   ;;  %s1730_s26 = smov 4  }
  0x50   : > { %1359 = dma.hbm_to_vmem [thread:$0]  (!%p1818_p6), %s273_s6, 4096, %s275_s15, %s264_s16, %s1729_s17, %s1729_s17, %s1730_s26  }
  0x51   : > { %286 = sbr.rel (%p1848_p8) target bundleno = 594 (0x252), region = 40  ;;  %p2030_p7 = scmp.eq.s32.totalorder (!%p1848_p8), %s1835_s29, 0 }
  0x56   : > { %1681 = dma.done.wait (%p2030_p7), [#allocation4], 256   ;;  %p2031_p0 = pmov %p2030_p7 }
  0x57   : > { %s292_s0 = sand.u32 1, %s1835_s29   ;;  %s294_s28 = sand.u32 1, %s1702_s19  }
  0x58   : > { %1683 = vsyncadd (%p2031_p0), [#allocation4], 4294967040  ;;  %s1211_s11 = sshll.u32 %s294_s28, 8  ;;  %s293_s14 = scalar_lea.sflag [#allocation7], %s292_s0 }
  0x59   : > { %s1901_s9 = scalar_lea.vmem [#allocation6], %s1211_s11 }
  0x5a   : > { %1685 = dma.done.wait (%p1844_p5), %s293_s14, 4160  }
  0x5b   : > { %1687 = vsyncadd (%p1844_p5), %s293_s14, 4294963136  ;;  %s1212_s10 = sshll.u32 %s294_s28, 2  ;;  %s311_s15 = scalar_lea.sflag [#allocation10], %s294_s28 }
  0x5c   : > { %s1907_s8 = scalar_lea.vmem [#allocation8], %s1212_s10  ;;  %s1909_s18 = scalar_lea.vmem [#allocation9], %s1211_s11 }
  0x5d   : > { %1689 = dma.done.wait (%p1844_p5), %s311_s15, 4096  }
  0x5e   : > { %1691 = vsyncadd (%p1844_p5), %s311_s15, 4294963200  ;;  %p1214_p6 = scmp.ne.s32.totalorder %s1710_s21, 0 }
  0x60   : > { %355 = sbr.rel (%p1214_p6) target bundleno = 103 (0x67), region = 60 }
  0x65   : > { %v1731_v0 = vmov 0.0  }
  0x66   : > { %356 = vst [vmem:[#allocation2] sm:$0xff] %v1731_v0  ;;  %357 = vst [vmem:[#allocation2 + $0x8] sm:$0xff] %v1731_v0 }
  0x67 PF: > { %v1426_v1 = vld [vmem:[%s1901_s9 + $0xe4] ss:$16 sps:$4 sm:$0xff]   ;;  %v1428_v2 = vld [vmem:[%s1901_s9 + $0xec] ss:$16 sps:$4 sm:$0xff]   ;;  %v1732_v3 = vmov 0   ;;  %p1279_p5 = scmp.ne.s32.totalorder %s1710_s21, 1 }
  0x68   : > { %607 = vmatprep.mubr.bf16.mxu0 %v1732_v3  ;;  %650 = vmatprep.mubr.bf16.mxu1 %v1732_v3  ;;  %v1430_v4 = vld [vmem:[%s1901_s9 + $0xe0] ss:$16 sps:$4 sm:$0xff]   ;;  %v1431_v5 = vld [vmem:[%s1901_s9 + $0xe8] ss:$16 sps:$4 sm:$0xff]   ;;  %v1432_v6 = vld [vmem:[%s1901_s9 + $0xc4] ss:$16 sps:$4 sm:$0xff]  }
  0x69   : > { %575 = vmatprep.subr.bf16.mxu0 %v1426_v1  ;;  %618 = vmatprep.subr.bf16.mxu1 %v1428_v2  ;;  %v1434_v7 = vld [vmem:[%s1901_s9 + $0xcc] ss:$16 sps:$4 sm:$0xff]   ;;  %v1436_v8 = vld [vmem:[%s1901_s9 + $0xc0] ss:$16 sps:$4 sm:$0xff]   ;;  %v1437_v9 = vld [vmem:[%s1901_s9 + $0xc8] ss:$16 sps:$4 sm:$0xff]  }
  0x6a   : > { %576 = vmatpush1.bf16.msra.mxu0 %v1430_v4  ;;  %619 = vmatpush1.bf16.msra.mxu1 %v1431_v5  ;;  %v1438_v10 = vld [vmem:[%s1901_s9 + $0xa4] ss:$16 sps:$4 sm:$0xff]   ;;  %v1440_v11 = vld [vmem:[%s1901_s9 + $0xac] ss:$16 sps:$4 sm:$0xff]   ;;  %v1442_v12 = vld [vmem:[%s1901_s9 + $0xa0] ss:$16 sps:$4 sm:$0xff]   ;;  %v395_v5 = vlaneseq }
  0x6b   : > { %577 = vmatprep.subr.bf16.mxu0 %v1432_v6  ;;  %620 = vmatprep.subr.bf16.mxu1 %v1434_v7  ;;  %v1443_v13 = vld [vmem:[%s1901_s9 + $0xa8] ss:$16 sps:$4 sm:$0xff]   ;;  %v1444_v14 = vld [vmem:[%s1901_s9 + $0x84] ss:$16 sps:$4 sm:$0xff]   ;;  %v1446_v15 = vld [vmem:[%s1901_s9 + $0x8c] ss:$16 sps:$4 sm:$0xff]  }
  0x6c   : > { %v1448_v16 = vld [vmem:[%s1901_s9 + $0x80] ss:$16 sps:$4 sm:$0xff]   ;;  %v1449_v17 = vld [vmem:[%s1901_s9 + $0x88] ss:$16 sps:$4 sm:$0xff]   ;;  %v1450_v18 = vld [vmem:[%s1901_s9 + $0x64] ss:$16 sps:$4 sm:$0xff]  }
  0x6d   : > { %v1452_v19 = vld [vmem:[%s1901_s9 + $0x6c] ss:$16 sps:$4 sm:$0xff]   ;;  %v1454_v20 = vld [vmem:[%s1901_s9 + $0x60] ss:$16 sps:$4 sm:$0xff]   ;;  %v1455_v21 = vld [vmem:[%s1901_s9 + $0x68] ss:$16 sps:$4 sm:$0xff]  }
  0x6e   : > { %578 = vmatpush1.bf16.msra.mxu0 %v1436_v8  ;;  %621 = vmatpush1.bf16.msra.mxu1 %v1437_v9  ;;  %v1456_v22 = vld [vmem:[%s1901_s9 + $0x44] ss:$16 sps:$4 sm:$0xff]   ;;  %v1458_v23 = vld [vmem:[%s1901_s9 + $0x4c] ss:$16 sps:$4 sm:$0xff]   ;;  %v1460_v24 = vld [vmem:[%s1901_s9 + $0x40] ss:$16 sps:$4 sm:$0xff]  }
  0x6f   : > { %579 = vmatprep.subr.bf16.mxu0 %v1438_v10  ;;  %622 = vmatprep.subr.bf16.mxu1 %v1440_v11  ;;  %v1461_v25 = vld [vmem:[%s1901_s9 + $0x48] ss:$16 sps:$4 sm:$0xff]   ;;  %v1462_v26 = vld [vmem:[%s1901_s9 + $0x24] ss:$16 sps:$4 sm:$0xff]   ;;  %v1464_v27 = vld [vmem:[%s1901_s9 + $0x2c] ss:$16 sps:$4 sm:$0xff]  }
  0x70   : > { %v1466_v28 = vld [vmem:[%s1901_s9 + $0x20] ss:$16 sps:$4 sm:$0xff]   ;;  %v1467_v29 = vld [vmem:[%s1901_s9 + $0x28] ss:$16 sps:$4 sm:$0xff]   ;;  %v1468_v30 = vld [vmem:[%s1901_s9 + $0x4] ss:$16 sps:$4 sm:$0xff]  }
  0x71   : > { %v1470_v31 = vld [vmem:[%s1901_s9 + $0xc] ss:$16 sps:$4 sm:$0xff]   ;;  %v1472_v32 = vld [vmem:[%s1901_s9] ss:$16 sps:$4 sm:$0xff]   ;;  %v1473_v33 = vld [vmem:[%s1901_s9 + $0x8] ss:$16 sps:$4 sm:$0xff]  }
  0x72   : > { %580 = vmatpush1.bf16.msra.mxu0 %v1442_v12  ;;  %623 = vmatpush1.bf16.msra.mxu1 %v1443_v13  ;;  %v358_v34 = vld [vmem:[#allocation3] sm:$0xff]  ;;  %v359_v35 = vld [vmem:[#allocation3 + $0x8] sm:$0xff]  ;;  %v1474_v37 = vld [vmem:[%s1909_s18 + $0x78] sm:$0xff]   ;;  %v396_v6 = vshrl.u32 %v395_v5, 7 }
  0x73   : > { %581 = vmatprep.subr.bf16.mxu0 %v1444_v14  ;;  %624 = vmatprep.subr.bf16.mxu1 %v1446_v15  ;;  %v360_v36 = vpack.c.bf16 %v359_v35, %v358_v34  ;;  %v1475_v38 = vld [vmem:[%s1909_s18 + $0xf8] sm:$0xff]   ;;  %v1478_v41 = vld [vmem:[%s1909_s18 + $0x70] sm:$0xff]   ;;  %v1482_v45 = vld [vmem:[%s1909_s18 + $0x68] sm:$0xff]  }
  0x74   : > { %v1476_v39 = vld [vmem:[%s1909_s18 + $0x38] sm:$0xff]   ;;  %v1479_v42 = vld [vmem:[%s1909_s18 + $0xf0] sm:$0xff]   ;;  %v1483_v46 = vld [vmem:[%s1909_s18 + $0xe8] sm:$0xff]   ;;  %v397_v7 = vsub.s32 0, %v396_v6  ;;  %v405_v8 = vsub.s32 2, %v396_v6  ;;  %v401_v10 = vsub.s32 1, %v396_v6 }
  0x75   : > { %v1477_v40 = vld [vmem:[%s1909_s18 + $0xb8] sm:$0xff]   ;;  %v1480_v43 = vld [vmem:[%s1909_s18 + $0x30] sm:$0xff]   ;;  %v1484_v47 = vld [vmem:[%s1909_s18 + $0x28] sm:$0xff]   ;;  %v409_v11 = vsub.s32 3, %v396_v6 }
  0x76   : > { %582 = vmatpush1.bf16.msra.mxu0 %v1448_v16  ;;  %625 = vmatpush1.bf16.msra.mxu1 %v1449_v17  ;;  %v1481_v44 = vld [vmem:[%s1909_s18 + $0xb0] sm:$0xff]   ;;  %v1485_v48 = vld [vmem:[%s1909_s18 + $0xa8] sm:$0xff]   ;;  %v1486_v49 = vld [vmem:[%s1909_s18 + $0x60] sm:$0xff]  }
  0x77   : > { %583 = vmatprep.subr.bf16.mxu0 %v1450_v18  ;;  %626 = vmatprep.subr.bf16.mxu1 %v1452_v19  ;;  %v1487_v50 = vld [vmem:[%s1909_s18 + $0xe0] sm:$0xff]   ;;  %v1490_v53 = vld [vmem:[%s1909_s18 + $0x58] sm:$0xff]   ;;  %v1494_v57 = vld [vmem:[%s1909_s18 + $0x50] sm:$0xff]  }
  0x78   : > { %v1488_v51 = vld [vmem:[%s1909_s18 + $0x20] sm:$0xff]   ;;  %v1491_v54 = vld [vmem:[%s1909_s18 + $0xd8] sm:$0xff]   ;;  %v1495_v58 = vld [vmem:[%s1909_s18 + $0xd0] sm:$0xff]  }
  0x79   : > { %v1489_v52 = vld [vmem:[%s1909_s18 + $0xa0] sm:$0xff]   ;;  %v1492_v55 = vld [vmem:[%s1909_s18 + $0x18] sm:$0xff]   ;;  %v1496_v59 = vld [vmem:[%s1909_s18 + $0x10] sm:$0xff]  }
  0x7a   : > { %584 = vmatpush1.bf16.msra.mxu0 %v1454_v20  ;;  %627 = vmatpush1.bf16.msra.mxu1 %v1455_v21  ;;  %v1493_v56 = vld [vmem:[%s1909_s18 + $0x98] sm:$0xff]   ;;  %v1497_v60 = vld [vmem:[%s1909_s18 + $0x90] sm:$0xff]   ;;  %v1498_v61 = vld [vmem:[%s1909_s18 + $0x48] sm:$0xff]  }
  0x7b   : > { %585 = vmatprep.subr.bf16.mxu0 %v1456_v22  ;;  %628 = vmatprep.subr.bf16.mxu1 %v1458_v23  ;;  %v1499_v62 = vld [vmem:[%s1909_s18 + $0xc8] sm:$0xff]   ;;  %v1502_v1 = vld [vmem:[%s1909_s18 + $0x40] sm:$0xff]   ;;  %v393_v9 = vld [vmem:[%s1907_s8] sm:$0xf] }
  0x7c   : > { %v1500_v63 = vld [vmem:[%s1909_s18 + $0x8] sm:$0xff]   ;;  %v1503_v2 = vld [vmem:[%s1909_s18 + $0xc0] sm:$0xff]   ;;  %v398_v12 = vrot.slane %v393_v9, %v397_v7  ;;  %v406_v13 = vrot.slane %v393_v9, %v405_v8  ;;  %v402_v16 = vrot.slane %v393_v9, %v401_v10  ;;  %v410_v17 = vrot.slane %v393_v9, %v409_v11 }
  0x7d   : > { %v1501_v0 = vld [vmem:[%s1909_s18 + $0x88] sm:$0xff]   ;;  %v1504_v3 = vld [vmem:[%s1909_s18] sm:$0xff]  }
  0x7e   : > { %586 = vmatpush1.bf16.msra.mxu0 %v1460_v24  ;;  %629 = vmatpush1.bf16.msra.mxu1 %v1461_v25  ;;  %v1505_v4 = vld [vmem:[%s1909_s18 + $0x80] sm:$0xff]  }
  0x7f   : > { %587 = vmatprep.subr.bf16.mxu0 %v1462_v26  ;;  %630 = vmatprep.subr.bf16.mxu1 %v1464_v27 }
  0x82   : > { %588 = vmatpush1.bf16.msra.mxu0 %v1466_v28  ;;  %631 = vmatpush1.bf16.msra.mxu1 %v1467_v29 }
  0x83   : > { %589 = vmatprep.subr.bf16.mxu0 %v1468_v30  ;;  %632 = vmatprep.subr.bf16.mxu1 %v1470_v31 }
  0x86   : > { %590 = vmatpush1.bf16.msra.mxu0 %v1472_v32  ;;  %633 = vmatpush1.bf16.msra.mxu1 %v1473_v33 }
  0x87   : > { %1288 = vmatprep.subr.bf16.mxu0 %v1474_v37  ;;  %1310 = vmatprep.subr.bf16.mxu1 %v1475_v38 }
  0x89   : > { %608 = vmatmul.mubr.bf16.vlgmr.msra.gmra.mxu0 %v360_v36  ;;  %651 = vmatmul.mubr.bf16.vlgmr.msra.gmra.mxu1 %v360_v36 }
  0x8a   : > { %1289 = vmatpush3.bf16.msra.mxu0 %v1476_v39  ;;  %1311 = vmatpush3.bf16.msra.mxu1 %v1477_v40 }
  0x8b   : > { %1290 = vmatprep.subr.bf16.mxu0 %v1478_v41  ;;  %1312 = vmatprep.subr.bf16.mxu1 %v1479_v42 }
  0x8e   : > { %1291 = vmatpush3.bf16.msra.mxu0 %v1480_v43  ;;  %1313 = vmatpush3.bf16.msra.mxu1 %v1481_v44 }
  0x8f   : > { %1292 = vmatprep.subr.bf16.mxu0 %v1482_v45  ;;  %1314 = vmatprep.subr.bf16.mxu1 %v1483_v46 }
  0x92   : > { %1293 = vmatpush3.bf16.msra.mxu0 %v1484_v47  ;;  %1315 = vmatpush3.bf16.msra.mxu1 %v1485_v48 }
  0x93   : > { %1294 = vmatprep.subr.bf16.mxu0 %v1486_v49  ;;  %1316 = vmatprep.subr.bf16.mxu1 %v1487_v50 }
  0x96   : > { %1295 = vmatpush3.bf16.msra.mxu0 %v1488_v51  ;;  %1317 = vmatpush3.bf16.msra.mxu1 %v1489_v52 }
  0x97   : > { %1296 = vmatprep.subr.bf16.mxu0 %v1490_v53  ;;  %1318 = vmatprep.subr.bf16.mxu1 %v1491_v54 }
  0x9a   : > { %1297 = vmatpush3.bf16.msra.mxu0 %v1492_v55  ;;  %1319 = vmatpush3.bf16.msra.mxu1 %v1493_v56 }
  0x9b   : > { %1298 = vmatprep.subr.bf16.mxu0 %v1494_v57  ;;  %1320 = vmatprep.subr.bf16.mxu1 %v1495_v58 }
  0x9e   : > { %1299 = vmatpush3.bf16.msra.mxu0 %v1496_v59  ;;  %1321 = vmatpush3.bf16.msra.mxu1 %v1497_v60 }
  0x9f   : > { %1300 = vmatprep.subr.bf16.mxu0 %v1498_v61  ;;  %1322 = vmatprep.subr.bf16.mxu1 %v1499_v62 }
  0xa2   : > { %1301 = vmatpush3.bf16.msra.mxu0 %v1500_v63  ;;  %1323 = vmatpush3.bf16.msra.mxu1 %v1501_v0 }
  0xa3   : > { %1302 = vmatprep.subr.bf16.mxu0 %v1502_v1  ;;  %1324 = vmatprep.subr.bf16.mxu1 %v1503_v2 }
  0xa6   : > { %1303 = vmatpush3.bf16.msra.mxu0 %v1504_v3  ;;  %1325 = vmatpush3.bf16.msra.mxu1 %v1505_v4 }
 0x149   : > { %v609_v14 = vpop.f32.mrf.mxu0  ;;  %v652_v15 = vpop.f32.mrf.mxu1 }
 0x14a   : > { %v610_v18 = vadd.f32 %v609_v14, %v398_v12  ;;  %v653_v19 = vadd.f32 %v652_v15, %v406_v13 }
 0x14b   : > { %v611_v20 = vpop.f32.mrf.mxu0  ;;  %v654_v21 = vpop.f32.mrf.mxu1 }
 0x14c   : > { %v669_v22 = vmul.f32 0.70710677, %v610_v18  ;;  %v671_v23 = vmul.f32 0.70710677, %v653_v19  ;;  %v612_v24 = vadd.f32 %v611_v20, %v402_v16  ;;  %v655_v25 = vadd.f32 %v654_v21, %v410_v17 }
 0x14d   : > { %v613_v26 = vpop.f32.mrf.mxu0  ;;  %v656_v27 = vpop.f32.mrf.mxu1  ;;  %v661_v46 = vmul.f32 0.5, %v610_v18  ;;  %v663_v0 = vmul.f32 0.5, %v653_v19  ;;  %v701_v19 = vld [vmem:[#allocation2] sm:$0xff] }
 0x14e   : > { %v614_v28 = vadd.f32 %v613_v26, %v398_v12  ;;  %v657_v29 = vadd.f32 %v656_v27, %v406_v13  ;;  %1506 = verf.f32 %v669_v22  ;;  %v670_v30 = vmul.f32 0.70710677, %v612_v24  ;;  %v702_v27 = vld [vmem:[#allocation2 + $0x8] sm:$0xff] }
 0x14f   : > { %v615_v31 = vpop.f32.mrf.mxu0  ;;  %v658_v32 = vpop.f32.mrf.mxu1  ;;  %1508 = verf.f32 %v671_v23  ;;  %v672_v33 = vmul.f32 0.70710677, %v655_v25  ;;  %v662_v47 = vmul.f32 0.5, %v612_v24  ;;  %v664_v60 = vmul.f32 0.5, %v655_v25 }
 0x150   : > { %v673_v34 = vmul.f32 0.70710677, %v614_v28  ;;  %1510 = verf.f32 %v670_v30  ;;  %v675_v35 = vmul.f32 0.70710677, %v657_v29  ;;  %v616_v36 = vadd.f32 %v615_v31, %v402_v16 }
 0x151   : > { %v659_v37 = vadd.f32 %v658_v32, %v410_v17  ;;  %1512 = verf.f32 %v672_v33  ;;  %v665_v53 = vmul.f32 0.5, %v614_v28  ;;  %v667_v57 = vmul.f32 0.5, %v657_v29 }
 0x152   : > { %1514 = verf.f32 %v673_v34  ;;  %v674_v38 = vmul.f32 0.70710677, %v616_v36  ;;  %v666_v58 = vmul.f32 0.5, %v616_v36 }
 0x153   : > { %1516 = verf.f32 %v675_v35  ;;  %v676_v39 = vmul.f32 0.70710677, %v659_v37  ;;  %v668_v62 = vmul.f32 0.5, %v659_v37 }
 0x154   : > { %1518 = verf.f32 %v674_v38 }
 0x155   : > { %1520 = verf.f32 %v676_v39 }
 0x15b   : > { %v1507_v40 = vpop.eup %1506 }
 0x15c   : > { %v1509_v41 = vpop.eup %1508  ;;  %v685_v51 = vadd.f32 1.0, %v1507_v40 }
 0x15d   : > { %v1511_v42 = vpop.eup %1510  ;;  %v687_v56 = vadd.f32 1.0, %v1509_v41 }
 0x15e   : > { %v1513_v43 = vpop.eup %1512  ;;  %v686_v48 = vadd.f32 1.0, %v1511_v42  ;;  %v693_v4 = vmul.f32 %v685_v51, %v661_v46 }
 0x15f   : > { %v1515_v44 = vpop.eup %1514  ;;  %v688_v52 = vadd.f32 1.0, %v1513_v43  ;;  %v695_v7 = vmul.f32 %v687_v56, %v663_v0 }
 0x160   : > { %v1517_v45 = vpop.eup %1516  ;;  %v689_v49 = vadd.f32 1.0, %v1515_v44  ;;  %v694_v1 = vmul.f32 %v686_v48, %v662_v47 }
 0x161   : > { %v1519_v50 = vpop.eup %1518  ;;  %v691_v54 = vadd.f32 1.0, %v1517_v45  ;;  %v696_v5 = vmul.f32 %v688_v52, %v664_v60 }
 0x162   : > { %v1521_v55 = vpop.eup %1520  ;;  %v690_v59 = vadd.f32 1.0, %v1519_v50  ;;  %v697_v61 = vmul.f32 %v689_v49, %v665_v53 }
 0x163   : > { %v692_v63 = vadd.f32 1.0, %v1521_v55  ;;  %v699_v2 = vmul.f32 %v691_v54, %v667_v57 }
 0x164   : > { %v698_v3 = vmul.f32 %v690_v59, %v666_v58  ;;  %v703_v9 = vpack.c.bf16 %v697_v61, %v693_v4 }
 0x165   : > { %v700_v6 = vmul.f32 %v692_v63, %v668_v62  ;;  %v705_v11 = vpack.c.bf16 %v699_v2, %v695_v7 }
 0x166   : > { %v704_v8 = vpack.c.bf16 %v698_v3, %v694_v1 }
 0x167   : > { %v706_v10 = vpack.c.bf16 %v700_v6, %v696_v5 }
 0x168   : > { %995 = vmatprep.mubr.bf16.mxu0 %v704_v8 }
 0x169   : > { %1036 = vmatprep.mubr.bf16.mxu1 %v706_v10  ;;  %996 = vmatmul.mubr.bf16.vlgmr.msra.gmra.mxu0 %v703_v9 }
 0x16a   : > { %1037 = vmatmul.mubr.bf16.vlgmr.msra.gmra.mxu1 %v705_v11 }
 0x229   : > { %v1304_v12 = vpop.f32.mrf.mxu0 }
 0x22a   : > { %v1326_v13 = vpop.f32.mrf.mxu1 }
 0x22b   : > { %v1305_v14 = vpop.f32.mrf.mxu0 }
 0x22c   : > { %v1306_v15 = vadd.f32 %v1305_v14, %v1304_v12  ;;  %v1327_v16 = vpop.f32.mrf.mxu1 }
 0x22d   : > { %v1328_v17 = vadd.f32 %v1327_v16, %v1326_v13  ;;  %v1307_v18 = vpop.f32.mrf.mxu0 }
 0x22e   : > { %v1329_v20 = vpop.f32.mrf.mxu1 }
 0x22f   : > { %v1039_v21 = vadd.f32 %v1328_v17, %v1306_v15  ;;  %v1308_v22 = vpop.f32.mrf.mxu0 }
 0x230   : > { %v1309_v23 = vadd.f32 %v1308_v22, %v1307_v18  ;;  %v1330_v24 = vpop.f32.mrf.mxu1 }
 0x231   : > { %v1045_v25 = vadd.f32 %v1039_v21, %v701_v19  ;;  %v1331_v26 = vadd.f32 %v1330_v24, %v1329_v20 }
 0x233   : > { %1047 = vst [vmem:[#allocation2] sm:$0xff] %v1045_v25  ;;  %v1042_v28 = vadd.f32 %v1331_v26, %v1309_v23  ;;  %1052 = sbr.rel (%p1279_p5) target bundleno = 578 (0x242), region = 64 }
 0x235   : > { %v1046_v29 = vadd.f32 %v1042_v28, %v702_v27 }
 0x237   : > { %1048 = vst [vmem:[#allocation2 + $0x8] sm:$0xff] %v1046_v29 }
 0x238   : > { %v1280_v31 = vld [vmem:[%s2019_s4] ss:$0 sm:$0xff] }
 0x23a   : > { %v1053_v30 = vld [vmem:[#allocation2] sm:$0xff] }
 0x23b   : > { %v1062_v33 = vadd.f32 %v1280_v31, %v1053_v30 }
 0x23d   : > { %1064 = vst [vmem:[#allocation11] sm:$0xff] %v1062_v33 }
 0x23e   : > { %v1054_v32 = vld [vmem:[#allocation2 + $0x8] sm:$0xff] }
 0x23f   : > { %v1063_v34 = vadd.f32 %v1280_v31, %v1054_v32 }
 0x241   : > { %1065 = vst [vmem:[#allocation11 + $0x8] sm:$0xff] %v1063_v34 }
 0x242 PF: > { %p1363_p8 = scmp.eq.s32.totalorder %s1835_s29, 1  ;;  %s1733_s6 = smov [#allocation11]  }
 0x243   : > { %s1075_s16 = sshll.u32 %s1733_s6, 4  ;;  %s1076_s16 = int_to_ptr.vmem [resolvable:$true] %s1075_s16 }
 0x244   : > { %s1632_s25 = scalar_lea.vmem %s1076_s16, 256  ;;  %p1639_p10 = scmp.lt.s32.totalorder %s1076_s16, %s1076_s16 }
 0x245   : > { %p1633_p1 = scmp.ne.s32.totalorder %s1076_s16, %s1632_s25  ;;  %p1640_p4 = scmp.lt.s32.totalorder %s1632_s25, %s1632_s25 }
 0x247   : > { %p1634_p3 = pnand %p1633_p1, %p1363_p8  ;;  %p1641_p9 = por %p1640_p4, %p1639_p10 }
 0x249   : > { %p1635_p2 = pneg %p1634_p3 }
 0x24b   : > { %p1642_p11 = pnand %p1641_p9, %p1635_p2 }
 0x24d   : > { %1645 = shalt.err (!%p1642_p11)
}
 0x24e   : > { %s1734_s21 = smov 128   ;;  %s1735_s27 = smov 8  }
 0x24f   : > { %1343 = dma.vmem_to_hbm [thread:$0]  (%p1363_p8), %s1076_s16, 256, %s2020_s5, [#allocation5], %s1734_s21, %s1734_s21, %s1735_s27  }
 0x250   : > { %1693 = dma.done.wait (%p1363_p8), [#allocation5], 256  }
 0x251   : > { %1695 = vsyncadd (%p1363_p8), [#allocation5], 4294967040 }
 0x252 PF: > { %s23_s23 = sadd.s32 1, %s1718_s23   ;;  %s2032_s18 = smov %s1702_s19 }
 0x253   : > { %p20_p12 = scmp.ge.s32.totalorder %s23_s23, 4   ;;  %s2033_s19 = smov %s1706_s20 }
 0x254   : > { %s2034_s20 = smov %s1812_s30  ;;  %s2035_s21 = smov %s1714_s22 }
 0x255   : > { %s2036_s22 = smov %s2038_s24  ;;  %22 = sbr.rel (!%p20_p12) target bundleno = 10 (0xa), region = 116 }
 0x25a   :  { %1091 = vsyncpa [#allocation4], 1 }
 0x25b   :  { %1093 = vsyncpa [#allocation4 + $0x1], 1 }
 0x25c   :  { %1094 = vsyncpa [#allocation7], 1 }
 0x25d   :  { %1096 = vsyncpa [#allocation7 + $0x1], 1 }
 0x25e   :  { %1097 = vsyncpa [#allocation10], 1 }
 0x25f   :  { %1099 = vsyncpa [#allocation10 + $0x1], 1 }
 0x260   :  { %1100 = vsyncpa [#allocation5], 1 }
 0x261   :  { %1102 = vsyncpa [#allocation5 + $0x1], 1 }

</bundles_post_ra>
